<compile_context>
chip_gen: v5e
topology: v5e:2x2
jax: 0.10.0
libtpu: 0.0.40
codegen_flags: <defaults>
</compile_context>

<pallas_src>
import functools

import jax
import jax.numpy as jnp
from jax.experimental import pallas as pl
from jax.experimental.pallas import tpu as pltpu


def _rmsnorm_kernel(x_ref, w_ref, o_ref, *, eps, inv_d):
    # x_ref: (rb, Dp) row block; w_ref: (1, Dp) weight; o_ref: (rb, Dp) output.
    x32 = x_ref[...].astype(jnp.float32)
    ssq = jnp.sum(x32 * x32, axis=-1, keepdims=True)        # per-row sum of squares
    inv_rms = jax.lax.rsqrt(ssq * inv_d + eps)               # mean = ssq / true_D; EUP rsqrt
    normed = (x32 * inv_rms).astype(x_ref.dtype)             # .type_as(x)
    o_ref[...] = (normed * w_ref[...]).astype(o_ref.dtype)   # * weight (cast is a trace-time no-op)


def _round_up(n, m):
    return ((n + m - 1) // m) * m


def _round_down(n, m):
    return (n // m) * m


@functools.partial(jax.jit, static_argnames=("eps",))
def rmsnorm_forward(x, weight, *, eps=1e-5):
    """x: (..., D); weight: (D,). Returns RMSNorm(x) * weight (PyTorch semantics)."""
    orig_shape = x.shape
    D = orig_shape[-1]
    x2 = x.reshape(-1, D)
    N = x2.shape[0]
    out_dtype = jnp.result_type(x.dtype, weight.dtype)

    # --- Lane-align the feature dim (no-op for the usual D % 128 == 0 case). ---
    Dp = _round_up(D, 128)
    if Dp != D:
        x2 = jnp.pad(x2, ((0, 0), (0, Dp - D)))
        w2 = jnp.pad(weight.reshape(1, D), ((0, 0), (0, Dp - D)))
    else:
        w2 = weight.reshape(1, D)

    in_bytes = jnp.dtype(x.dtype).itemsize
    out_bytes = jnp.dtype(out_dtype).itemsize
    w_bytes = jnp.dtype(weight.dtype).itemsize

    # --- Row-block size from a VMEM byte budget (multiple of 8 sublanes). ---
    block_budget = 4 * 1024 * 1024                  # one live (in + out) copy
    row_bytes = Dp * (in_bytes + out_bytes)
    rb = max(8, _round_down(block_budget // row_bytes, 8))
    rb = min(rb, 1024)                               # roofline plateaus past ~512 rows
    rb = min(rb, _round_up(N, 8))
    if N < 8:
        rb = N                                       # full-dim block, exempt from 8-sublane rule
    elif pl.cdiv(N, rb) < 2:
        # Keep >= 2 grid steps so megacore (v7x: 2 TCs) can shard the row axis.
        rb = max(8, _round_up(pl.cdiv(N, 2), 8))
    grid = (pl.cdiv(N, rb),)

    # --- Explicit VMEM limit from the actual footprint (+ headroom). ---
    footprint = (2 * rb * Dp * in_bytes              # double-buffered input block
                 + 2 * rb * Dp * out_bytes           # double-buffered output block
                 + 2 * rb * Dp * 4                   # ~2 f32 temporaries
                 + 2 * Dp * w_bytes)                 # weight
    vmem_limit = min(max(2 * footprint, 32 * 1024 * 1024), 64 * 1024 * 1024)

    # TODO(synk): for very large D (>= 16K) on v7x, split D onto a second
    # "arbitrary" grid axis with a sum-of-squares scratch + pl.when finalize.

    grid_spec = pltpu.PrefetchScalarGridSpec(
        num_scalar_prefetch=0,
        grid=grid,
        in_specs=[
            pl.BlockSpec((rb, Dp), lambda i: (i, 0)),    # row block of x
            pl.BlockSpec((1, Dp), lambda i: (0, 0)),     # weight (index-invariant, DMA'd once)
        ],
        out_specs=pl.BlockSpec((rb, Dp), lambda i: (i, 0)),
    )

    out = pl.pallas_call(
        functools.partial(_rmsnorm_kernel, eps=eps, inv_d=1.0 / D),
        out_shape=jax.ShapeDtypeStruct((N, Dp), out_dtype),
        grid_spec=grid_spec,
        compiler_params=pltpu.CompilerParams(
            dimension_semantics=("parallel",),
            vmem_limit_bytes=vmem_limit),
    )(x2, w2)

    if Dp != D:
        out = out[:, :D]
    return out.reshape(orig_shape)


def _reference(x, weight, eps=1e-5):
    xf = x.astype(jnp.float32)
    normed = xf * jax.lax.rsqrt(jnp.mean(xf * xf, axis=-1, keepdims=True) + eps)
    return normed.astype(x.dtype) * weight


if __name__ == "__main__":
    eps = 1e-5
    key = jax.random.PRNGKey(0)
    kx, kw, kx2 = jax.random.split(key, 3)

    # Small shapes consistent with the module: batch=2, seq=8, dim=32.
    B, T, D = 2, 8, 32
    x = jax.random.normal(kx, (B, T, D), dtype=jnp.float32)
    # Module initializes weight = ones(dim); perturb slightly so the scale is exercised.
    weight = jnp.ones((D,), dtype=jnp.float32) + 0.1 * jax.random.normal(kw, (D,), dtype=jnp.float32)

    out = jax.block_until_ready(rmsnorm_forward(x, weight, eps=eps))
    ref = _reference(x, weight, eps=eps)
    assert out.shape == (B, T, D) and out.dtype == ref.dtype
    assert jnp.allclose(out, ref, atol=1e-5, rtol=1e-5), "mismatch vs JAX reference"

    # Ragged row count (N=15, not a multiple of the 8-row block): exercises the
    # clipped last block / masked-store path that replaced the wrapper pad+slice.
    x_ragged = jax.random.normal(kx2, (3, 5, D), dtype=jnp.float32)
    out_r = jax.block_until_ready(rmsnorm_forward(x_ragged, weight, eps=eps))
    ref_r = _reference(x_ragged, weight, eps=eps)
    assert jnp.allclose(out_r, ref_r, atol=1e-5, rtol=1e-5), "mismatch (ragged) vs JAX reference"

    print("KERNEL_OK")
</pallas_src>

<mosaic_0001>
module attributes {stable_mosaic.version = 11 : i64} {
  func.func @_rmsnorm_kernel(%arg0: i32, %arg1: memref<8x128xf32, #tpu.memory_space<vmem>>, %arg2: memref<1x128xf32, #tpu.memory_space<vmem>>, %arg3: memref<8x128xf32, #tpu.memory_space<vmem>>) attributes {dimension_semantics = [#tpu.dimension_semantics<parallel>], iteration_bounds = array<i64: 2>, scalar_prefetch = 0 : i64, scratch_operands = 0 : i64, tpu.core_type = #tpu.core_type<tc>, window_params = [{transform_indices = @transform_0, window_bounds = array<i64: 8, 128>}, {pipeline_mode = #tpu.pipeline_mode<synchronous>, transform_indices = @transform_1, window_bounds = array<i64: 1, 128>}, {transform_indices = @transform_2, window_bounds = array<i64: 8, 128>}]} {
    %c0 = arith.constant 0 : index
    %c0_0 = arith.constant 0 : index
    %0 = vector.load %arg1[%c0, %c0_0] : memref<8x128xf32, #tpu.memory_space<vmem>>, vector<8x128xf32>
    %1 = arith.mulf %0, %0 : vector<8x128xf32>
    %cst = arith.constant dense<0.000000e+00> : vector<8xf32>
    %2 = vector.multi_reduction <add>, %1, %cst [1] : vector<8x128xf32> to vector<8xf32>
    %3 = vector.shape_cast %2 : vector<8xf32> to vector<8x1xf32>
    %cst_1 = arith.constant 3.125000e-02 : f32
    %4 = vector.broadcast %cst_1 : f32 to vector<8x1xf32>
    %5 = arith.mulf %3, %4 : vector<8x1xf32>
    %cst_2 = arith.constant 9.99999974E-6 : f32
    %6 = vector.broadcast %cst_2 : f32 to vector<8x1xf32>
    %7 = arith.addf %5, %6 : vector<8x1xf32>
    %8 = math.rsqrt %7 : vector<8x1xf32>
    %9 = vector.broadcast %8 : vector<8x1xf32> to vector<8x128xf32>
    %10 = arith.mulf %0, %9 : vector<8x128xf32>
    %c0_3 = arith.constant 0 : index
    %c0_4 = arith.constant 0 : index
    %11 = vector.load %arg2[%c0_3, %c0_4] : memref<1x128xf32, #tpu.memory_space<vmem>>, vector<1x128xf32>
    %12 = vector.broadcast %11 : vector<1x128xf32> to vector<8x128xf32>
    %13 = arith.mulf %10, %12 : vector<8x128xf32>
    %c0_5 = arith.constant 0 : index
    %c0_6 = arith.constant 0 : index
    %14 = vector.load %arg3[%c0_5, %c0_6] : memref<8x128xf32, #tpu.memory_space<vmem>>, vector<8x128xf32>
    tpu.vector_store %arg3[%c0_5, %c0_6], %13 {strides = array<i32>} : memref<8x128xf32, #tpu.memory_space<vmem>>, vector<8x128xf32>,
    return
  }
  func.func @transform_0(%arg0: i32) -> (i32, i32) {
    %c0_i32 = arith.constant 0 : i32
    %c0_i32_0 = arith.constant 0 : i32
    return %arg0, %c0_i32 : i32, i32
  }
  func.func @transform_1(%arg0: i32) -> (i32, i32) {
    %c0_i32 = arith.constant 0 : i32
    %c0_i32_0 = arith.constant 0 : i32
    %c0_i32_1 = arith.constant 0 : i32
    return %c0_i32, %c0_i32_0 : i32, i32
  }
  func.func @transform_2(%arg0: i32) -> (i32, i32) {
    %c0_i32 = arith.constant 0 : i32
    %c0_i32_0 = arith.constant 0 : i32
    return %arg0, %c0_i32 : i32, i32
  }
}

</mosaic_0001>

<bundles_post_ra>
// kernel: rmsnorm_forward.1
= control target key start
LH: loop header
LB: loop body
LE: loop exit
PB: predicated region body
PF: predicated region fallthrough
CT: control target
= control target key end

     0   :  { %s258_s9 = smov 0   ;;  %s278_s0 = inlined_call_operand.vmem [shape: f32[16,128], index: 0, kind: input, shape index: {}]   ;;  %s279_s1 = inlined_call_operand.vmem [shape: f32[1,128], index: 1, kind: input, shape index: {}]   ;;  %s280_s2 = inlined_call_operand.vmem [shape: f32[16,128], index: 2, kind: output, shape index: {}]  }
   0x1 LB: > { %s215_s10 = sadd.s32 4294967295, %s241_s9   ;;  %p219_p0 = scmp.ge.s32.totalorder %s241_s9, 1  ;;  %s241_s9 = sphi %s258_s9, %s12_s9  }
   0x2   : > { %p111_p1 = scmp.lt.s32.totalorder %s241_s9, 3 }
   0x4   : > { %p112_p2 = pnand %p219_p0, %p111_p1 }
   0x5   : > { %p131_p3 = scmp.lt.s32.totalorder (!%p112_p2), %s215_s10, 1 }
   0x6   : > { %115 = sbr.rel (%p112_p2) target bundleno = 160 (0xa0), region = 28 }
   0xb   : > { %s282_s10 = smov (!%p131_p3, %s215_s10), 1  ;;  %v232_v11 = vld [vmem:[%s279_s1] ss:$0 sm:$0xff] }
   0xc   : > { %s220_s11 = sshll.u32 %s282_s10, 3 }
   0xd   : > { %s134_s14 = scalar_lea.vmem %s278_s0, %s220_s11  ;;  %s138_s19 = scalar_lea.vmem %s280_s2, %s220_s11 }
   0xe   : > { %v139_v0 = vld [vmem:[%s134_s14] sm:$0xff] }
   0xf   : > { %v140_v1 = vmul.f32 %v139_v0, %v139_v0 }
  0x11   : > { %141 = vadd.xlane.f32.xlu0 %v140_v1 }
  0x84   : > { %v142_v2 = vpop.xlane.xlu0 %141 }
  0x85   : > { %v143_v3 = vmul.f32 0.03125, %v142_v2 }
  0x87   : > { %v144_v4 = vadd.f32 1e-05, %v143_v3 }
  0x89   : > { %233 = vrsqrt.f32 %v144_v4  ;;  %vm151_vm1 = vweird.f32 %v144_v4 }
  0x8f   : > { %v234_v5 = vpop.eup %233 }
  0x90   : > { %v146_v6 = vmul.f32 %v234_v5, %v144_v4  ;;  %vm152_vm0 = vweird.f32 %v234_v5 }
  0x91   : > { %vm153_vm2 = vmor %vm151_vm1, %vm152_vm0 }
  0x92   : > { %v147_v7 = vmul.f32 %v234_v5, %v146_v6 }
  0x94   : > { %v148_v8 = vmul.f32 0.5, %v147_v7 }
  0x96   : > { %v149_v9 = vsub.f32 1.5, %v148_v8 }
  0x98   : > { %v150_v10 = vmul.f32 %v234_v5, %v149_v9 }
  0x9a   : > { %v154_v12 = vsel %vm153_vm2, %v234_v5, %v150_v10 }
  0x9b   : > { %v155_v13 = vmul.f32 %v154_v12, %v139_v0 }
  0x9d   : > { %v160_v14 = vmul.f32 %v232_v11, %v155_v13 }
  0x9f   : > { %161 = vst [vmem:[%s138_s19] sm:$0xff] %v160_v14 }
  0xa0 PF: > { %s12_s9 = sadd.s32 1, %s241_s9  }
  0xa1   : > { %p9_p4 = scmp.ge.s32.totalorder %s12_s9, 4  }
  0xa3   :  { %11 = sbr.rel (!%p9_p4) target bundleno = 1 (0x1), region = 58 }

</bundles_post_ra>
